<compile_context>
chip_gen: v5e
topology: v5e:2x2
jax: 0.10.0
libtpu: 0.0.40
codegen_flags: <defaults>
</compile_context>

<pallas_src>
import functools

import jax
import jax.numpy as jnp
from jax import lax
from jax.experimental import pallas as pl
from jax.experimental.pallas import tpu as pltpu

LANES = 128
NCORES = 2       # leading "parallel" grid axis (megacore on v7x; harmless on 1-TC chips)
MAX_TM = 1024    # block rows: 2 inputs x 2 buffers x 1024*128*4B = 2 MiB VMEM (f32 worst case)


def _dice_bce_kernel(x_ref, t_ref, o_ref,
                     inter_acc, psum_acc, tsum_acc, bce_acc,
                     *, n_valid, tm, needs_mask):
    c = pl.program_id(0)   # parallel (core) axis
    i = pl.program_id(1)   # reduction axis

    @pl.when(i == 0)
    def _():
        inter_acc[...] = jnp.zeros_like(inter_acc)
        psum_acc[...] = jnp.zeros_like(psum_acc)
        tsum_acc[...] = jnp.zeros_like(tsum_acc)
        bce_acc[...] = jnp.zeros_like(bce_acc)

    x = x_ref[...].astype(jnp.float32)
    t = t_ref[...].astype(jnp.float32)

    # Sigmoid + numerically-stable BCE-with-logits sharing one exp:
    #   e = exp(-|x|)
    #   sigmoid(x) = 1/(1+e)        if x >= 0
    #              = e/(1+e)        if x <  0
    #   bce(x, t)  = max(x,0) - x*t + log1p(e)
    e = jnp.exp(-jnp.abs(x))
    inv_1pe = 1.0 / (1.0 + e)
    p = jnp.where(x >= 0, inv_1pe, e * inv_1pe)
    bce_elem = jnp.maximum(x, 0.0) - x * t + jnp.log1p(e)

    if needs_mask:
        # Validity from the static element count (zero-padding only at the tail).
        base = (c * pl.num_programs(1) + i) * (tm * LANES)
        row = lax.broadcasted_iota(jnp.int32, (tm, LANES), 0)
        lane = lax.broadcasted_iota(jnp.int32, (tm, LANES), 1)
        valid = (base + row * LANES + lane) < n_valid
        p = jnp.where(valid, p, 0.0)
        t = jnp.where(valid, t, 0.0)
        bce_elem = jnp.where(valid, bce_elem, 0.0)

    def tile_reduce(v):
        # (tm, 128) -> (8, 128): sum over the sublane-group axis only.
        # This is a chain of whole-vreg adds (VPU); no XLU cross-lane work.
        return jnp.sum(v.reshape(tm // 8, 8, LANES), axis=0)

    inter_acc[...] += tile_reduce(p * t)
    psum_acc[...] += tile_reduce(p)
    tsum_acc[...] += tile_reduce(t)
    bce_acc[...] += tile_reduce(bce_elem)

    @pl.when(i == pl.num_programs(1) - 1)
    def _():
        o_ref[0, 0] = inter_acc[...]
        o_ref[0, 1] = psum_acc[...]
        o_ref[0, 2] = tsum_acc[...]
        o_ref[0, 3] = bce_acc[...]


def dice_bce_loss(inputs, targets, smooth=1.0):
    """Pallas TPU implementation of DiceBCELoss.forward(inputs, targets)."""
    x = jnp.ravel(inputs)          # keep native dtype; cast happens in-kernel
    t = jnp.ravel(targets)
    n = x.shape[0]

    rows = (n + LANES - 1) // LANES
    # Block rows: as large as MAX_TM, but no larger than (roughly) each core's share.
    tm = min(MAX_TM, (((rows + NCORES - 1) // NCORES) + 7) // 8 * 8)
    tm = max(tm, 8)
    rows_padded = ((rows + NCORES * tm - 1) // (NCORES * tm)) * (NCORES * tm)
    pad = rows_padded * LANES - n

    x = jnp.pad(x, (0, pad))
    t = jnp.pad(t, (0, pad))
    x2 = x.reshape(rows_padded, LANES)
    t2 = t.reshape(rows_padded, LANES)

    inner = rows_padded // (NCORES * tm)
    kernel = functools.partial(_dice_bce_kernel,
                               n_valid=n, tm=tm, needs_mask=(pad > 0))

    partials = pl.pallas_call(
        kernel,
        out_shape=jax.ShapeDtypeStruct((NCORES, 4, 8, LANES), jnp.float32),
        grid_spec=pltpu.PrefetchScalarGridSpec(
            num_scalar_prefetch=0,
            grid=(NCORES, inner),
            in_specs=[
                pl.BlockSpec((tm, LANES), lambda c, i: (c * inner + i, 0)),
                pl.BlockSpec((tm, LANES), lambda c, i: (c * inner + i, 0)),
            ],
            out_specs=pl.BlockSpec((1, 4, 8, LANES), lambda c, i: (c, 0, 0, 0)),
            scratch_shapes=[
                pltpu.VMEM((8, LANES), jnp.float32),  # intersection partials
                pltpu.VMEM((8, LANES), jnp.float32),  # sum(sigmoid(x)) partials
                pltpu.VMEM((8, LANES), jnp.float32),  # sum(t) partials
                pltpu.VMEM((8, LANES), jnp.float32),  # bce-sum partials
            ],
        ),
        compiler_params=pltpu.CompilerParams(
            dimension_semantics=("parallel", "arbitrary")),
    )(x2, t2)

    # Combine per-core / per-lane partials and do the tiny scalar math in XLA.
    sums = jnp.sum(partials, axis=(0, 2, 3))  # [inter, psum, tsum, bce_sum]
    inter, psum, tsum, bce_sum = sums[0], sums[1], sums[2], sums[3]
    dice_loss = 1.0 - (2.0 * inter + smooth) / (psum + tsum + smooth)
    bce_mean = bce_sum / jnp.float32(n)
    return bce_mean + dice_loss


def _reference(inputs, targets, smooth=1.0):
    p = jax.nn.sigmoid(inputs.astype(jnp.float32)).reshape(-1)
    t = targets.reshape(-1).astype(jnp.float32)
    inter = jnp.sum(p * t)
    dice = 1.0 - (2.0 * inter + smooth) / (jnp.sum(p) + jnp.sum(t) + smooth)
    bce = jnp.mean(-(t * jnp.log(p) + (1.0 - t) * jnp.log(1.0 - p)))
    return bce + dice


if __name__ == "__main__":
    key = jax.random.PRNGKey(0)

    # Test 1: NCHW-shaped logits / binary targets (tile-aligned element count).
    k1, k2, k3, k4 = jax.random.split(key, 4)
    x = jax.random.normal(k1, (2, 4, 16, 16), dtype=jnp.float32)
    t = (jax.random.uniform(k2, (2, 4, 16, 16)) > 0.5).astype(jnp.float32)
    loss = dice_bce_loss(x, t, smooth=1.0)
    jax.block_until_ready(loss)
    ref = _reference(x, t, smooth=1.0)
    assert jnp.allclose(loss, ref, rtol=1e-5, atol=1e-5), (loss, ref)

    # Test 2: non-tile-aligned element count (exercises the in-kernel iota mask).
    x2 = jax.random.normal(k3, (3, 5, 7, 11), dtype=jnp.float32)
    t2 = (jax.random.uniform(k4, (3, 5, 7, 11)) > 0.5).astype(jnp.float32)
    loss2 = dice_bce_loss(x2, t2, smooth=1.0)
    jax.block_until_ready(loss2)
    ref2 = _reference(x2, t2, smooth=1.0)
    assert jnp.allclose(loss2, ref2, rtol=1e-5, atol=1e-5), (loss2, ref2)

    print("KERNEL_OK")
</pallas_src>

<mosaic_0001>
module attributes {stable_mosaic.version = 11 : i64} {
  func.func @_dice_bce_kernel(%arg0: i32, %arg1: i32, %arg2: memref<8x128xf32, #tpu.memory_space<vmem>>, %arg3: memref<8x128xf32, #tpu.memory_space<vmem>>, %arg4: memref<1x4x8x128xf32, #tpu.memory_space<vmem>>, %arg5: memref<8x128xf32, #tpu.memory_space<vmem>>, %arg6: memref<8x128xf32, #tpu.memory_space<vmem>>, %arg7: memref<8x128xf32, #tpu.memory_space<vmem>>, %arg8: memref<8x128xf32, #tpu.memory_space<vmem>>) attributes {dimension_semantics = [#tpu.dimension_semantics<parallel>, #tpu.dimension_semantics<arbitrary>], iteration_bounds = array<i64: 2, 1>, scalar_prefetch = 0 : i64, scratch_operands = 4 : i64, tpu.core_type = #tpu.core_type<tc>, window_params = [{transform_indices = @transform_0, window_bounds = array<i64: 8, 128>}, {transform_indices = @transform_1, window_bounds = array<i64: 8, 128>}, {transform_indices = @transform_2, window_bounds = array<i64: 1, 4, 8, 128>}]} {
    %c0_i32 = arith.constant 0 : i32
    %0 = arith.cmpi eq, %arg1, %c0_i32 : i32
    %1 = arith.extui %0 : i1 to i32
    %c0_i32_0 = arith.constant 0 : i32
    %2 = arith.cmpi ne, %1, %c0_i32_0 : i32
    scf.if %2 {
      %cst_30 = arith.constant 0.000000e+00 : f32
      %47 = vector.broadcast %cst_30 : f32 to vector<8x128xf32>
      %c0_31 = arith.constant 0 : index
      %c0_32 = arith.constant 0 : index
      %48 = vector.load %arg5[%c0_31, %c0_32] : memref<8x128xf32, #tpu.memory_space<vmem>>, vector<8x128xf32>
      tpu.vector_store %arg5[%c0_31, %c0_32], %47 {strides = array<i32>} : memref<8x128xf32, #tpu.memory_space<vmem>>, vector<8x128xf32>,
      %cst_33 = arith.constant 0.000000e+00 : f32
      %49 = vector.broadcast %cst_33 : f32 to vector<8x128xf32>
      %c0_34 = arith.constant 0 : index
      %c0_35 = arith.constant 0 : index
      %50 = vector.load %arg6[%c0_34, %c0_35] : memref<8x128xf32, #tpu.memory_space<vmem>>, vector<8x128xf32>
      tpu.vector_store %arg6[%c0_34, %c0_35], %49 {strides = array<i32>} : memref<8x128xf32, #tpu.memory_space<vmem>>, vector<8x128xf32>,
      %cst_36 = arith.constant 0.000000e+00 : f32
      %51 = vector.broadcast %cst_36 : f32 to vector<8x128xf32>
      %c0_37 = arith.constant 0 : index
      %c0_38 = arith.constant 0 : index
      %52 = vector.load %arg7[%c0_37, %c0_38] : memref<8x128xf32, #tpu.memory_space<vmem>>, vector<8x128xf32>
      tpu.vector_store %arg7[%c0_37, %c0_38], %51 {strides = array<i32>} : memref<8x128xf32, #tpu.memory_space<vmem>>, vector<8x128xf32>,
      %cst_39 = arith.constant 0.000000e+00 : f32
      %53 = vector.broadcast %cst_39 : f32 to vector<8x128xf32>
      %c0_40 = arith.constant 0 : index
      %c0_41 = arith.constant 0 : index
      %54 = vector.load %arg8[%c0_40, %c0_41] : memref<8x128xf32, #tpu.memory_space<vmem>>, vector<8x128xf32>
      tpu.vector_store %arg8[%c0_40, %c0_41], %53 {strides = array<i32>} : memref<8x128xf32, #tpu.memory_space<vmem>>, vector<8x128xf32>,
    } else {
    }
    %c0 = arith.constant 0 : index
    %c0_1 = arith.constant 0 : index
    %3 = vector.load %arg2[%c0, %c0_1] : memref<8x128xf32, #tpu.memory_space<vmem>>, vector<8x128xf32>
    %c0_2 = arith.constant 0 : index
    %c0_3 = arith.constant 0 : index
    %4 = vector.load %arg3[%c0_2, %c0_3] : memref<8x128xf32, #tpu.memory_space<vmem>>, vector<8x128xf32>
    %5 = math.absf %3 : vector<8x128xf32>
    %cst = arith.constant 0.000000e+00 : f32
    %6 = vector.broadcast %cst : f32 to vector<8x128xf32>
    %7 = arith.subf %6, %5 : vector<8x128xf32>
    %8 = math.exp %7 : vector<8x128xf32>
    %cst_4 = arith.constant 1.000000e+00 : f32
    %9 = vector.broadcast %cst_4 : f32 to vector<8x128xf32>
    %10 = arith.addf %9, %8 : vector<8x128xf32>
    %cst_5 = arith.constant 1.000000e+00 : f32
    %11 = vector.broadcast %cst_5 : f32 to vector<8x128xf32>
    %12 = arith.divf %11, %10 : vector<8x128xf32>
    %cst_6 = arith.constant 0.000000e+00 : f32
    %13 = vector.broadcast %cst_6 : f32 to vector<8x128xf32>
    %14 = arith.cmpf oge, %3, %13 : vector<8x128xf32>
    %15 = arith.mulf %8, %12 : vector<8x128xf32>
    %16 = arith.select %14, %12, %15 : vector<8x128xi1>, vector<8x128xf32>
    %cst_7 = arith.constant 0.000000e+00 : f32
    %17 = vector.broadcast %cst_7 : f32 to vector<8x128xf32>
    %18 = arith.maximumf %3, %17 : vector<8x128xf32>
    %19 = arith.mulf %3, %4 : vector<8x128xf32>
    %20 = arith.subf %18, %19 : vector<8x128xf32>
    %21 = math.log1p %8 : vector<8x128xf32>
    %22 = arith.addf %20, %21 : vector<8x128xf32>
    %c0_8 = arith.constant 0 : index
    %c0_9 = arith.constant 0 : index
    %23 = vector.load %arg5[%c0_8, %c0_9] : memref<8x128xf32, #tpu.memory_space<vmem>>, vector<8x128xf32>
    %24 = arith.mulf %16, %4 : vector<8x128xf32>
    %25 = vector.shape_cast %24 : vector<8x128xf32> to vector<1x8x128xf32>
    %cst_10 = arith.constant dense<0.000000e+00> : vector<8x128xf32>
    %26 = vector.multi_reduction <add>, %25, %cst_10 [0] : vector<1x8x128xf32> to vector<8x128xf32>
    %27 = arith.addf %23, %26 : vector<8x128xf32>
    %c0_11 = arith.constant 0 : index
    %c0_12 = arith.constant 0 : index
    %28 = vector.load %arg5[%c0_11, %c0_12] : memref<8x128xf32, #tpu.memory_space<vmem>>, vector<8x128xf32>
    tpu.vector_store %arg5[%c0_11, %c0_12], %27 {strides = array<i32>} : memref<8x128xf32, #tpu.memory_space<vmem>>, vector<8x128xf32>,
    %c0_13 = arith.constant 0 : index
    %c0_14 = arith.constant 0 : index
    %29 = vector.load %arg6[%c0_13, %c0_14] : memref<8x128xf32, #tpu.memory_space<vmem>>, vector<8x128xf32>
    %30 = vector.shape_cast %16 : vector<8x128xf32> to vector<1x8x128xf32>
    %cst_15 = arith.constant dense<0.000000e+00> : vector<8x128xf32>
    %31 = vector.multi_reduction <add>, %30, %cst_15 [0] : vector<1x8x128xf32> to vector<8x128xf32>
    %32 = arith.addf %29, %31 : vector<8x128xf32>
    %c0_16 = arith.constant 0 : index
    %c0_17 = arith.constant 0 : index
    %33 = vector.load %arg6[%c0_16, %c0_17] : memref<8x128xf32, #tpu.memory_space<vmem>>, vector<8x128xf32>
    tpu.vector_store %arg6[%c0_16, %c0_17], %32 {strides = array<i32>} : memref<8x128xf32, #tpu.memory_space<vmem>>, vector<8x128xf32>,
    %c0_18 = arith.constant 0 : index
    %c0_19 = arith.constant 0 : index
    %34 = vector.load %arg7[%c0_18, %c0_19] : memref<8x128xf32, #tpu.memory_space<vmem>>, vector<8x128xf32>
    %35 = vector.shape_cast %4 : vector<8x128xf32> to vector<1x8x128xf32>
    %cst_20 = arith.constant dense<0.000000e+00> : vector<8x128xf32>
    %36 = vector.multi_reduction <add>, %35, %cst_20 [0] : vector<1x8x128xf32> to vector<8x128xf32>
    %37 = arith.addf %34, %36 : vector<8x128xf32>
    %c0_21 = arith.constant 0 : index
    %c0_22 = arith.constant 0 : index
    %38 = vector.load %arg7[%c0_21, %c0_22] : memref<8x128xf32, #tpu.memory_space<vmem>>, vector<8x128xf32>
    tpu.vector_store %arg7[%c0_21, %c0_22], %37 {strides = array<i32>} : memref<8x128xf32, #tpu.memory_space<vmem>>, vector<8x128xf32>,
    %c0_23 = arith.constant 0 : index
    %c0_24 = arith.constant 0 : index
    %39 = vector.load %arg8[%c0_23, %c0_24] : memref<8x128xf32, #tpu.memory_space<vmem>>, vector<8x128xf32>
    %40 = vector.shape_cast %22 : vector<8x128xf32> to vector<1x8x128xf32>
    %cst_25 = arith.constant dense<0.000000e+00> : vector<8x128xf32>
    %41 = vector.multi_reduction <add>, %40, %cst_25 [0] : vector<1x8x128xf32> to vector<8x128xf32>
    %42 = arith.addf %39, %41 : vector<8x128xf32>
    %c0_26 = arith.constant 0 : index
    %c0_27 = arith.constant 0 : index
    %43 = vector.load %arg8[%c0_26, %c0_27] : memref<8x128xf32, #tpu.memory_space<vmem>>, vector<8x128xf32>
    tpu.vector_store %arg8[%c0_26, %c0_27], %42 {strides = array<i32>} : memref<8x128xf32, #tpu.memory_space<vmem>>, vector<8x128xf32>,
    %c0_i32_28 = arith.constant 0 : i32
    %44 = arith.cmpi eq, %arg1, %c0_i32_28 : i32
    %45 = arith.extui %44 : i1 to i32
    %c0_i32_29 = arith.constant 0 : i32
    %46 = arith.cmpi ne, %45, %c0_i32_29 : i32
    scf.if %46 {
      %c0_30 = arith.constant 0 : index
      %c0_31 = arith.constant 0 : index
      %47 = vector.load %arg5[%c0_30, %c0_31] : memref<8x128xf32, #tpu.memory_space<vmem>>, vector<8x128xf32>
      %c0_32 = arith.constant 0 : index
      %c0_33 = arith.constant 0 : index
      %c0_34 = arith.constant 0 : index
      %c0_35 = arith.constant 0 : index
      %48 = vector.load %arg4[%c0_32, %c0_33, %c0_34, %c0_35] : memref<1x4x8x128xf32, #tpu.memory_space<vmem>>, vector<1x1x8x128xf32>
      %49 = vector.shape_cast %48 : vector<1x1x8x128xf32> to vector<8x128xf32>
      %50 = vector.shape_cast %47 : vector<8x128xf32> to vector<1x1x8x128xf32>
      tpu.vector_store %arg4[%c0_32, %c0_33, %c0_34, %c0_35], %50 {strides = array<i32>} : memref<1x4x8x128xf32, #tpu.memory_space<vmem>>, vector<1x1x8x128xf32>,
      %c0_36 = arith.constant 0 : index
      %c0_37 = arith.constant 0 : index
      %51 = vector.load %arg6[%c0_36, %c0_37] : memref<8x128xf32, #tpu.memory_space<vmem>>, vector<8x128xf32>
      %c0_38 = arith.constant 0 : index
      %c1 = arith.constant 1 : index
      %c0_39 = arith.constant 0 : index
      %c0_40 = arith.constant 0 : index
      %52 = vector.load %arg4[%c0_38, %c1, %c0_39, %c0_40] : memref<1x4x8x128xf32, #tpu.memory_space<vmem>>, vector<1x1x8x128xf32>
      %53 = vector.shape_cast %52 : vector<1x1x8x128xf32> to vector<8x128xf32>
      %54 = vector.shape_cast %51 : vector<8x128xf32> to vector<1x1x8x128xf32>
      tpu.vector_store %arg4[%c0_38, %c1, %c0_39, %c0_40], %54 {strides = array<i32>} : memref<1x4x8x128xf32, #tpu.memory_space<vmem>>, vector<1x1x8x128xf32>,
      %c0_41 = arith.constant 0 : index
      %c0_42 = arith.constant 0 : index
      %55 = vector.load %arg7[%c0_41, %c0_42] : memref<8x128xf32, #tpu.memory_space<vmem>>, vector<8x128xf32>
      %c0_43 = arith.constant 0 : index
      %c2 = arith.constant 2 : index
      %c0_44 = arith.constant 0 : index
      %c0_45 = arith.constant 0 : index
      %56 = vector.load %arg4[%c0_43, %c2, %c0_44, %c0_45] : memref<1x4x8x128xf32, #tpu.memory_space<vmem>>, vector<1x1x8x128xf32>
      %57 = vector.shape_cast %56 : vector<1x1x8x128xf32> to vector<8x128xf32>
      %58 = vector.shape_cast %55 : vector<8x128xf32> to vector<1x1x8x128xf32>
      tpu.vector_store %arg4[%c0_43, %c2, %c0_44, %c0_45], %58 {strides = array<i32>} : memref<1x4x8x128xf32, #tpu.memory_space<vmem>>, vector<1x1x8x128xf32>,
      %c0_46 = arith.constant 0 : index
      %c0_47 = arith.constant 0 : index
      %59 = vector.load %arg8[%c0_46, %c0_47] : memref<8x128xf32, #tpu.memory_space<vmem>>, vector<8x128xf32>
      %c0_48 = arith.constant 0 : index
      %c3 = arith.constant 3 : index
      %c0_49 = arith.constant 0 : index
      %c0_50 = arith.constant 0 : index
      %60 = vector.load %arg4[%c0_48, %c3, %c0_49, %c0_50] : memref<1x4x8x128xf32, #tpu.memory_space<vmem>>, vector<1x1x8x128xf32>
      %61 = vector.shape_cast %60 : vector<1x1x8x128xf32> to vector<8x128xf32>
      %62 = vector.shape_cast %59 : vector<8x128xf32> to vector<1x1x8x128xf32>
      tpu.vector_store %arg4[%c0_48, %c3, %c0_49, %c0_50], %62 {strides = array<i32>} : memref<1x4x8x128xf32, #tpu.memory_space<vmem>>, vector<1x1x8x128xf32>,
    } else {
    }
    return
  }
  func.func @transform_0(%arg0: i32, %arg1: i32) -> (i32, i32) {
    %c1_i32 = arith.constant 1 : i32
    %0 = arith.muli %arg0, %c1_i32 : i32
    %1 = arith.addi %0, %arg1 : i32
    %c0_i32 = arith.constant 0 : i32
    %c0_i32_0 = arith.constant 0 : i32
    return %1, %c0_i32 : i32, i32
  }
  func.func @transform_1(%arg0: i32, %arg1: i32) -> (i32, i32) {
    %c1_i32 = arith.constant 1 : i32
    %0 = arith.muli %arg0, %c1_i32 : i32
    %1 = arith.addi %0, %arg1 : i32
    %c0_i32 = arith.constant 0 : i32
    %c0_i32_0 = arith.constant 0 : i32
    return %1, %c0_i32 : i32, i32
  }
  func.func @transform_2(%arg0: i32, %arg1: i32) -> (i32, i32, i32, i32) {
    %c0_i32 = arith.constant 0 : i32
    %c0_i32_0 = arith.constant 0 : i32
    %c0_i32_1 = arith.constant 0 : i32
    %c0_i32_2 = arith.constant 0 : i32
    return %arg0, %c0_i32, %c0_i32_0, %c0_i32_1 : i32, i32, i32, i32
  }
}

</mosaic_0001>

<bundles_post_ra>
// kernel: tpu_custom_call.1
= control target key start
LH: loop header
LB: loop body
LE: loop exit
PB: predicated region body
PF: predicated region fallthrough
CT: control target
= control target key end

     0   :  { %7 = vsyncpa [#allocation7], 0  ;;  %s816_s0 = inlined_call_operand.hbm [shape: f32[16,128], index: 0, kind: input, shape index: {}]   ;;  %s817_s1 = inlined_call_operand.hbm [shape: f32[16,128], index: 1, kind: input, shape index: {}]   ;;  %s818_s2 = inlined_call_operand.hbm [shape: f32[2,4,8,128], index: 2, kind: output, shape index: {}]  }
   0x1   :  { %9 = vsyncpa [#allocation7 + $0x1], 0 }
   0x2   :  { %10 = vsyncpa [#allocation10], 0 }
   0x3   :  { %12 = vsyncpa [#allocation10 + $0x1], 0 }
   0x4   :  { %13 = vsyncpa [#allocation8], 0 }
   0x5   :  { %15 = vsyncpa [#allocation8 + $0x1], 0  ;;  %s680_s9 = smov 0   ;;  %s682_s10 = smov 0  }
   0x6   :  { %s684_s11 = smov 0   ;;  %s686_s12 = smov 0  }
   0x7   :  { %s688_s13 = smov 0   ;;  %s690_s14 = smov 0  }
   0x8 LB: > { %s419_s15 = sadd.s32 4294967295, %s661_s14   ;;  %s420_s16 = sadd.s32 4294967294, %s661_s14   ;;  %s661_s14 = sphi %s690_s14, %s21_s14   ;;  %s657_s13 = sphi %s688_s13, %s827_s13   ;;  %s653_s12 = sphi %s686_s12, %s826_s12   ;;  %s649_s11 = sphi %s684_s11, %s825_s11   ;;  %s645_s10 = sphi %s682_s10, %s824_s10   ;;  %s641_s9 = sphi %s680_s9, %s823_s9  }
   0x9   : > { %s33_s17 = sadd.s32 1, %s657_s13  ;;  %s42_s18 = sadd.s32 1, %s649_s11 }
   0xa   : > { %p35_p0 = scmp.ge.s32.totalorder %s33_s17, 2  ;;  %p49_p1 = scmp.ne.s32.totalorder %s649_s11, %s645_s10 }
   0xb   : > { %p50_p2 = scmp.eq.s32.totalorder %s661_s14, 0  ;;  %p55_p3 = scmp.ne.s32.totalorder %s645_s10, %s641_s9 }
   0xc   : > { %s829_s17 = smov (%p35_p0, %s33_s17), 0  ;;  %p56_p5 = scmp.eq.s32.totalorder %s419_s15, 0 }
   0xd   : > { %p721_p4 = por %p50_p2, %p49_p1  ;;  %s39_s20 = ssub.s32 %s657_s13, %s829_s17 }
   0xe   : > { %p107_p6 = scmp.eq.s32.totalorder %s419_s15, 1  ;;  %p40_p7 = scmp.eq.s32.totalorder %s39_s20, 0 }
   0xf   : > { %p727_p8 = por %p56_p5, %p55_p3  ;;  %p113_p10 = scmp.eq.s32.totalorder %s420_s16, 1 }
  0x10   : > { %p731_p9 = por %p107_p6, %p49_p1  ;;  %p422_p12 = scmp.ge.s32.totalorder %s661_s14, 2 }
  0x11   : > { %s736_s23 = scalar_select %p40_p7, %s649_s11, %s42_s18  }
  0x12   : > { %p738_p11 = por %p113_p10, %p55_p3  ;;  %p457_p13 = scmp.lt.s32.totalorder %s661_s14, 2 }
  0x13   : > { %s133_s25 = sand.u32 1, %s649_s11   ;;  %s424_s27 = sshll.u32 %s657_s13, 3 }
  0x14   : > { %s423_s26 = sshll.u32 %s133_s25, 3  ;;  %s142_s30 = scalar_lea.hbm %s816_s0, %s424_s27 }
  0x15   : > { %s137_s3 = scalar_lea.vmem [#allocation6], %s423_s26  ;;  %s144_s5 = sshll.u32 %s142_s30, 4  ;;  %s145_s5 = int_to_ptr.hbm [resolvable:$true] %s144_s5 }
  0x16   : > { %s146_s4 = sshll.u32 %s137_s3, 4  ;;  %p447_p0 = pnand %p457_p13, %p721_p4  ;;  %s147_s4 = int_to_ptr.vmem [resolvable:$true] %s146_s4 }
  0x17   : > { %p427_p1 = scmp.ge.s32.totalorder %s661_s14, 1  ;;  %p171_p2 = scmp.lt.s32.totalorder %s661_s14, 3 }
  0x18   : > { %s134_s6 = scalar_lea.sflag [#allocation7], %s133_s25  ;;  %s162_s15 = scalar_lea.hbm %s817_s1, %s424_s27 }
  0x19   : > { %449 = dma.hbm_to_vmem [thread:$0]  (!%p447_p0), %s145_s5, 128, %s147_s4, %s134_s6  }
  0x1a   : > { %p172_p3 = pnand %p427_p1, %p171_p2  ;;  %s157_s16 = scalar_lea.vmem [#allocation9], %s423_s26 }
  0x1b   : > { %s166_s18 = sshll.u32 %s157_s16, 4  ;;  %s164_s20 = sshll.u32 %s162_s15, 4  ;;  %s167_s18 = int_to_ptr.vmem [resolvable:$true] %s166_s18  ;;  %s165_s20 = int_to_ptr.hbm [resolvable:$true] %s164_s20 }
  0x1c   : > { %s154_s28 = scalar_lea.sflag [#allocation10], %s133_s25  ;;  %175 = sbr.rel (%p172_p3) target bundleno = 78 (0x4e), region = 28 }
  0x1d   : > { %452 = dma.hbm_to_vmem [thread:$0]  (!%p447_p0), %s165_s20, 128, %s167_s18, %s154_s28  }
  0x1e   : > { %s757_s19 = sand.u32 (!%p172_p3), 1, %s645_s10  }
  0x1f   : > { %s428_s29 = sshll.u32 (!%p172_p3), %s757_s19, 3  ;;  %s178_s30 = scalar_lea.sflag (!%p172_p3), [#allocation7], %s757_s19 }
  0x20   : > { %s181_s3 = scalar_lea.vmem (!%p172_p3), [#allocation6], %s428_s29 }
  0x21   : > { %628 = dma.done.wait (%p727_p8), %s178_s30, 128  }
  0x22   : > { %630 = vsyncadd (%p727_p8), %s178_s30, 4294967168  ;;  %s188_s26 = scalar_lea.sflag [#allocation10], %s757_s19  ;;  %s191_s25 = scalar_lea.vmem [#allocation9], %s428_s29 }
  0x23   : > { %632 = dma.done.wait (%p727_p8), %s188_s26, 128  }
  0x24   : > { %634 = vsyncadd (%p727_p8), %s188_s26, 4294967168  ;;  %s430_s27 = sshll.u32 %s757_s19, 5  ;;  %v228_v0 = vld [vmem:[%s181_s3] sm:$0xff]  ;;  %v229_v1 = vld [vmem:[%s191_s25] sm:$0xff]  ;;  %s439_s21 = sshll.u32 %s653_s12, 5 }
  0x25   : > { %v230_v2 = vand.u32 2147483647, %v228_v0  ;;  %s771_s4 = scalar_lea.vmem [#allocation11], %s430_s27  ;;  %v253_v9 = vmax.f32 %v228_v0, 0.0  ;;  %v254_v10 = vmul.f32 %v229_v1, %v228_v0  ;;  %s309_s7 = scalar_lea.hbm %s818_s2, %s439_s21  ;;  %vm250_vm5 = vcmp.ge.f32.partialorder %v228_v0, 0.0 }
  0x26   : > { %432 = vst [vmem:[%s771_s4 + $0x10] sm:$0xff] %v229_v1  ;;  %s310_s8 = sshll.u32 %s771_s4, 4  ;;  %s312_s12 = sshll.u32 %s309_s7, 4  ;;  %s311_s8 = int_to_ptr.vmem [resolvable:$true] %s310_s8  ;;  %s313_s12 = int_to_ptr.hbm [resolvable:$true] %s312_s12 }
  0x27   : > { %v231_v3 = vsub.f32 0.0, %v230_v2  ;;  %v255_v16 = vsub.f32 %v253_v9, %v254_v10  ;;  %s298_s15 = scalar_lea.sflag [#allocation8], %s757_s19  ;;  %s589_s16 = sshra.s32 %s313_s12, 4  ;;  %s590_s16 = int_to_ptr.hbm [resolvable:$true] %s589_s16 }
  0x28   : > { %s591_s18 = scalar_lea.hbm %s590_s16, 32  ;;  %s595_s29 = scalar_lea.hbm %s818_s2, 64 }
  0x29   : > { %v232_v4 = vmul.f32 1.442695, %v231_v3  ;;  %p592_p4 = scmp.ne.s32.totalorder %s590_s16, %s591_s18  ;;  %p596_p7 = scmp.lt.s32.totalorder %s590_s16, %s818_s2 }
  0x2a   : > { %p597_p8 = scmp.lt.s32.totalorder %s595_s29, %s591_s18 }
  0x2b   : > { %509 = vpow2.f32 %v232_v4  ;;  %p593_p5 = pnand %p592_p4, %p731_p9 }
  0x2c   : > { %p598_p10 = por %p597_p8, %p596_p7 }
  0x2d   : > { %p594_p6 = pneg %p593_p5 }
  0x2f   : > { %p599_p13 = pnand %p598_p10, %p594_p6 }
  0x31   : > { %v510_v5 = vpop.eup %509 }
  0x32   : > { %v234_v6 = vadd.f32 1.0, %v510_v5  ;;  %v259_v7 = vmul.f32 -0.5, %v510_v5  ;;  %v262_v11 = vand.u32 2147483647, %v510_v5 }
  0x34   : > { %511 = vrcp.f32 %v234_v6  ;;  %v260_v8 = vadd.f32 1.0, %v259_v7  ;;  %vm263_vm0 = vcmp.lt.f32.partialorder %v262_v11, 0.0004427343  ;;  %v246_v17 = vand.u32 2147483648, %v234_v6 }
  0x35   : > { %513 = vlog2.f32 %v234_v6  ;;  %vm240_vm1 = vweird.f32 %v234_v6  ;;  %v244_v20 = vand.u32 2147483647, %v234_v6 }
  0x36   : > { %v261_v13 = vmul.f32 %v510_v5, %v260_v8  ;;  %v247_v24 = vor.u32 1.1754944e-38, %v246_v17 }
  0x37   : > { %vm245_vm4 = vcmp.eq.f32.partialorder %v244_v20, 8.507059e+37 }
  0x3a   : > { %v512_v12 = vpop.eup %511 }
  0x3b   : > { %v514_v14 = vpop.eup %513  ;;  %v236_v15 = vmul.f32 %v512_v12, %v234_v6  ;;  %vm241_vm2 = vweird.f32 %v512_v12 }
  0x3c   : > { %v258_v18 = vmul.f32 0.6931472, %v514_v14  ;;  %vm242_vm3 = vmor %vm240_vm1, %vm241_vm2 }
  0x3d   : > { %v237_v19 = vsub.f32 1.0, %v236_v15 }
  0x3e   : > { %v264_v21 = vsel %vm263_vm0, %v261_v13, %v258_v18 }
  0x3f   : > { %v238_v22 = vmul.f32 %v512_v12, %v237_v19  ;;  %v265_v23 = vadd.f32 %v264_v21, %v255_v16 }
  0x41   : > { %v239_v25 = vadd.f32 %v512_v12, %v238_v22  ;;  %433 = vst [vmem:[%s771_s4 + $0x18] sm:$0xff] %v265_v23 }
  0x43   : > { %v243_v26 = vsel %vm242_vm3, %v512_v12, %v239_v25 }
  0x44   : > { %v248_v27 = vsel %vm245_vm4, %v247_v24, %v243_v26 }
  0x45   : > { %v251_v28 = vmul.f32 %v510_v5, %v248_v27 }
  0x47   : > { %v252_v29 = vsel %vm250_vm5, %v248_v27, %v251_v28 }
  0x48   : > { %v267_v30 = vmul.f32 %v252_v29, %v229_v1  ;;  %431 = vst [vmem:[%s771_s4 + $0x8] sm:$0xff] %v252_v29 }
  0x4a   : > { %287 = vst [vmem:[%s771_s4] sm:$0xff] %v267_v30 }
  0x4b   : > { %602 = shalt.err (!%p599_p13)
}
  0x4c   : > { %s663_s19 = smov 128   ;;  %s664_s26 = smov 8  }
  0x4d   : > { %444 = dma.vmem_to_hbm [thread:$0]  (%p731_p9), %s311_s8, 512, %s313_s12, %s298_s15, %s663_s19, %s663_s19, %s664_s26  }
  0x4e PF: > { %s327_s25 = sand.u32 1, %s641_s9   ;;  %p454_p0 = pnand %p422_p12, %p738_p11 }
  0x4f   : > { %s328_s27 = scalar_lea.sflag [#allocation8], %s327_s25 }
  0x50   : > { %p455_p1 = pneg %p454_p0 }
  0x52   : > { %636 = dma.done.wait (%p455_p1), %s328_s27, 512  }
  0x53   : > { %638 = vsyncadd (%p455_p1), %s328_s27, 4294966784  ;;  %s21_s14 = sadd.s32 1, %s661_s14   ;;  %s823_s9 = smov %s645_s10 }
  0x54   : > { %p18_p2 = scmp.ge.s32.totalorder %s21_s14, 4   ;;  %s824_s10 = smov %s649_s11 }
  0x55   : > { %s825_s11 = smov %s736_s23  ;;  %s826_s12 = smov %s657_s13 }
  0x56   : > { %s827_s13 = smov %s829_s17  ;;  %20 = sbr.rel (!%p18_p2) target bundleno = 8 (0x8), region = 97 }
  0x5b   :  { %334 = vsyncpa [#allocation7], 1 }
  0x5c   :  { %336 = vsyncpa [#allocation7 + $0x1], 1 }
  0x5d   :  { %337 = vsyncpa [#allocation10], 1 }
  0x5e   :  { %339 = vsyncpa [#allocation10 + $0x1], 1 }
  0x5f   :  { %340 = vsyncpa [#allocation8], 1 }
  0x60   :  { %342 = vsyncpa [#allocation8 + $0x1], 1 }

</bundles_post_ra>
